<compile_context>
chip_gen: v6e
topology: v6e:2x2x1
jax: 0.10.0
libtpu: 0.0.40
codegen_flags: <defaults>
</compile_context>

<pallas_src>
import jax
import jax.numpy as jnp
from jax import lax
from jax.experimental import pallas as pl
from jax.experimental.pallas import tpu as pltpu

_LANES = 128
_SUBLANES = 8
_STRIP_ROWS = 512                       # rows per in-kernel accumulation strip
_TARGET_BLOCK_BYTES = 4 * 1024 * 1024   # ~4 MiB per input block
_VMEM_LIMIT_BYTES = 32 * 1024 * 1024    # raise v5e's 16 MiB scoped default


def _sublane_multiple(dtype) -> int:
    # f32 -> 8, bf16/f16 -> 16, int8/fp8 -> 32 (sub-32-bit packs along sublanes)
    itemsize = jnp.dtype(dtype).itemsize
    return max(_SUBLANES, (_SUBLANES * 4) // itemsize)


def mean_absolute_error(pred, target, *, block_bytes=_TARGET_BLOCK_BYTES):
    assert pred.shape == target.shape, "Prediction and target must have the same shape"
    n = pred.size

    pf = pred.reshape(-1)
    tf = target.reshape(-1)

    # Elements that don't fill a whole (8, 128) vreg tile are reduced directly
    # by XLA (< 1024 elements).  This replaces the old concatenate-based
    # padding, which copied both full inputs in HBM for unaligned sizes.
    n_main = (n // (_LANES * _SUBLANES)) * (_LANES * _SUBLANES)
    rem = n - n_main

    total = jnp.float32(0.0)
    if rem:
        tail_p = pf[n_main:].astype(jnp.float32)
        tail_t = tf[n_main:].astype(jnp.float32)
        total = total + jnp.sum(jnp.abs(tail_p - tail_t))

    rows = n_main // _LANES
    if rows == 0:
        # Tiny input: pure XLA fallback.
        return (total / jnp.float32(n)).astype(jnp.float32)

    if rem:
        p2 = pf[:n_main].reshape(rows, _LANES)
        t2 = tf[:n_main].reshape(rows, _LANES)
    else:
        p2 = pf.reshape(rows, _LANES)   # reshape only: no HBM copy
        t2 = tf.reshape(rows, _LANES)

    item_p = jnp.dtype(pred.dtype).itemsize
    item_t = jnp.dtype(target.dtype).itemsize
    itemsize = max(item_p, item_t)
    sublane = max(_sublane_multiple(pred.dtype), _sublane_multiple(target.dtype))

    # Tile sizing: ~block_bytes per input block, rounded to the dtype's
    # sublane multiple.  Small arrays use a single full-extent block.
    max_tile_rows = block_bytes // (_LANES * itemsize)
    max_tile_rows = max(sublane, (max_tile_rows // sublane) * sublane)

    if rows <= max_tile_rows:
        tile_rows = rows                 # full-array block (always legal)
    else:
        tile_rows = max_tile_rows        # multiple of sublane (and of 8)

    nblocks = -(-rows // tile_rows)

    # Two independent chunks whenever there is more than one block so v7x's
    # two TensorCores each stream half of the reduction; serial elsewhere.
    n_chunks = 2 if nblocks >= 2 else 1
    steps = -(-nblocks // n_chunks)

    needs_clamp = (n_chunks * steps) != nblocks
    needs_mask = needs_clamp or (rows % tile_rows != 0)

    # Static strip layout inside one block (keeps f32 temporaries small).
    strips = []
    r0 = 0
    while r0 < tile_rows:
        rlen = min(_STRIP_ROWS, tile_rows - r0)
        strips.append((r0, rlen))
        r0 += rlen

    def _mae_kernel(p_ref, t_ref, acc_ref):
        pi = pl.program_id(0)
        si = pl.program_id(1)

        @pl.when(si == 0)
        def _():
            acc_ref[...] = jnp.zeros_like(acc_ref)

        idx = pi * steps + si
        row_base = idx * tile_rows

        partial = jnp.zeros((_SUBLANES, _LANES), jnp.float32)
        for s0, slen in strips:  # static strip bounds, multiples of 8 rows
            pv = p_ref[pl.ds(s0, slen), :].astype(jnp.float32)
            tv = t_ref[pl.ds(s0, slen), :].astype(jnp.float32)
            d = jnp.abs(pv - tv)
            if needs_mask:
                # Ragged / beyond-the-end blocks: zero out-of-range rows.
                gr = row_base + s0 + lax.broadcasted_iota(
                    jnp.int32, (slen, _LANES), 0)
                d = jnp.where(gr < rows, d, 0.0)
            # Reduce only the leading (vreg-count) axis: pure VPU adds, no
            # XLU / scalar work in the hot loop; keeps 1024 partial chains
            # for better summation accuracy than a single scalar.
            partial = partial + d.reshape(slen // _SUBLANES, _SUBLANES,
                                          _LANES).sum(axis=0)
        acc_ref[...] += partial

    if needs_clamp:
        # Blocks past the end re-read the last block; they are fully masked.
        def in_map(p, s):
            return (jnp.minimum(p * steps + s, nblocks - 1), 0)
    else:
        def in_map(p, s):
            return (p * steps + s, 0)

    cost = pl.CostEstimate(
        flops=3 * n_main,
        transcendentals=0,
        bytes_accessed=n_main * (item_p + item_t)
        + _SUBLANES * _LANES * n_chunks * 4,
    )

    partials = pl.pallas_call(
        _mae_kernel,
        out_shape=jax.ShapeDtypeStruct((_SUBLANES, _LANES * n_chunks),
                                       jnp.float32),
        grid_spec=pltpu.PrefetchScalarGridSpec(
            num_scalar_prefetch=0,
            grid=(n_chunks, steps),
            in_specs=[
                pl.BlockSpec((tile_rows, _LANES), in_map),
                pl.BlockSpec((tile_rows, _LANES), in_map),
            ],
            # Output block depends only on the parallel axis -> stays resident
            # in VMEM across the reduction axis and acts as the accumulator.
            out_specs=pl.BlockSpec((_SUBLANES, _LANES), lambda p, s: (0, p)),
        ),
        compiler_params=pltpu.CompilerParams(
            # TODO(synk): evaluate pltpu.CORE_PARALLEL on v7x if plain
            # "parallel" does not shard the chunk axis across TensorCores.
            dimension_semantics=("parallel", "arbitrary"),
            vmem_limit_bytes=_VMEM_LIMIT_BYTES,
        ),
        cost_estimate=cost,
    )(p2, t2)

    # Single final cross-lane reduce + divide (tiny, done once in XLA).
    total = total + jnp.sum(partials)
    return (total / jnp.float32(n)).astype(jnp.float32)


if __name__ == "__main__":
    key = jax.random.PRNGKey(0)
    k1, k2, k3, k4, k5, k6 = jax.random.split(key, 6)

    # 1) Main check: batch=2, channels=4, spatial=16x16, f32.
    pred = jax.random.normal(k1, (2, 4, 16, 16), dtype=jnp.float32)
    target = jax.random.normal(k2, (2, 4, 16, 16), dtype=jnp.float32)
    out = jax.block_until_ready(mean_absolute_error(pred, target))
    ref = jnp.mean(jnp.abs(pred - target))
    assert jnp.allclose(out, ref, rtol=1e-5, atol=1e-6), (out, ref)

    # 2) bf16 inputs stay bf16 in HBM; cast to f32 inside the kernel.
    pb = jax.random.normal(k3, (4, 4, 16, 16), dtype=jnp.bfloat16)
    tb = jax.random.normal(k4, (4, 4, 16, 16), dtype=jnp.bfloat16)
    out_b = jax.block_until_ready(mean_absolute_error(pb, tb))
    ref_b = jnp.mean(jnp.abs(pb.astype(jnp.float32) - tb.astype(jnp.float32)))
    assert jnp.allclose(out_b, ref_b, rtol=1e-4, atol=1e-5), (out_b, ref_b)

    # 3) Unaligned size + forced multi-block path (tiny block_bytes override
    #    exercises the ragged-block mask, 2-chunk split and clamped index_map).
    pu = jax.random.normal(k5, (4, 3, 831), dtype=jnp.float32)
    tu = jax.random.normal(k6, (4, 3, 831), dtype=jnp.float32)
    out_u = jax.block_until_ready(
        mean_absolute_error(pu, tu, block_bytes=16 * 1024))
    ref_u = jnp.mean(jnp.abs(pu - tu))
    assert jnp.allclose(out_u, ref_u, rtol=1e-5, atol=1e-6), (out_u, ref_u)

    print("KERNEL_OK")
</pallas_src>

<mosaic_0001>
module attributes {stable_mosaic.version = 11 : i64} {
  func.func @_mae_kernel(%arg0: i32, %arg1: i32, %arg2: memref<16x128xf32, #tpu.memory_space<vmem>>, %arg3: memref<16x128xf32, #tpu.memory_space<vmem>>, %arg4: memref<8x128xf32, #tpu.memory_space<vmem>>) attributes {dimension_semantics = [#tpu.dimension_semantics<parallel>, #tpu.dimension_semantics<arbitrary>], iteration_bounds = array<i64: 1, 1>, scalar_prefetch = 0 : i64, scratch_operands = 0 : i64, tpu.core_type = #tpu.core_type<tc>, window_params = [{transform_indices = @transform_0, window_bounds = array<i64: 16, 128>}, {transform_indices = @transform_1, window_bounds = array<i64: 16, 128>}, {transform_indices = @transform_2, window_bounds = array<i64: 8, 128>}]} {
    %c0_i32 = arith.constant 0 : i32
    %0 = arith.cmpi eq, %arg1, %c0_i32 : i32
    %1 = arith.extui %0 : i1 to i32
    %c0_i32_0 = arith.constant 0 : i32
    %2 = arith.cmpi ne, %1, %c0_i32_0 : i32
    scf.if %2 {
      %cst_9 = arith.constant 0.000000e+00 : f32
      %14 = vector.broadcast %cst_9 : f32 to vector<8x128xf32>
      %c0_10 = arith.constant 0 : index
      %c0_11 = arith.constant 0 : index
      %15 = vector.load %arg4[%c0_10, %c0_11] : memref<8x128xf32, #tpu.memory_space<vmem>>, vector<8x128xf32>
      tpu.vector_store %arg4[%c0_10, %c0_11], %14 {strides = array<i32>} : memref<8x128xf32, #tpu.memory_space<vmem>>, vector<8x128xf32>,
    } else {
    }
    %cst = arith.constant 0.000000e+00 : f32
    %3 = vector.broadcast %cst : f32 to vector<8x128xf32>
    %c0 = arith.constant 0 : index
    %c0_1 = arith.constant 0 : index
    %4 = vector.load %arg2[%c0, %c0_1] : memref<16x128xf32, #tpu.memory_space<vmem>>, vector<16x128xf32>
    %c0_2 = arith.constant 0 : index
    %c0_3 = arith.constant 0 : index
    %5 = vector.load %arg3[%c0_2, %c0_3] : memref<16x128xf32, #tpu.memory_space<vmem>>, vector<16x128xf32>
    %6 = arith.subf %4, %5 : vector<16x128xf32>
    %7 = math.absf %6 : vector<16x128xf32>
    %8 = vector.shape_cast %7 : vector<16x128xf32> to vector<2x8x128xf32>
    %cst_4 = arith.constant dense<0.000000e+00> : vector<8x128xf32>
    %9 = vector.multi_reduction <add>, %8, %cst_4 [0] : vector<2x8x128xf32> to vector<8x128xf32>
    %10 = arith.addf %3, %9 : vector<8x128xf32>
    %c0_5 = arith.constant 0 : index
    %c0_6 = arith.constant 0 : index
    %11 = vector.load %arg4[%c0_5, %c0_6] : memref<8x128xf32, #tpu.memory_space<vmem>>, vector<8x128xf32>
    %12 = arith.addf %11, %10 : vector<8x128xf32>
    %c0_7 = arith.constant 0 : index
    %c0_8 = arith.constant 0 : index
    %13 = vector.load %arg4[%c0_7, %c0_8] : memref<8x128xf32, #tpu.memory_space<vmem>>, vector<8x128xf32>
    tpu.vector_store %arg4[%c0_7, %c0_8], %12 {strides = array<i32>} : memref<8x128xf32, #tpu.memory_space<vmem>>, vector<8x128xf32>,
    return
  }
  func.func @transform_0(%arg0: i32, %arg1: i32) -> (i32, i32) {
    %c1_i32 = arith.constant 1 : i32
    %0 = arith.muli %arg0, %c1_i32 : i32
    %1 = arith.addi %0, %arg1 : i32
    %c0_i32 = arith.constant 0 : i32
    %c0_i32_0 = arith.constant 0 : i32
    return %1, %c0_i32 : i32, i32
  }
  func.func @transform_1(%arg0: i32, %arg1: i32) -> (i32, i32) {
    %c1_i32 = arith.constant 1 : i32
    %0 = arith.muli %arg0, %c1_i32 : i32
    %1 = arith.addi %0, %arg1 : i32
    %c0_i32 = arith.constant 0 : i32
    %c0_i32_0 = arith.constant 0 : i32
    return %1, %c0_i32 : i32, i32
  }
  func.func @transform_2(%arg0: i32, %arg1: i32) -> (i32, i32) {
    %c0_i32 = arith.constant 0 : i32
    %c0_i32_0 = arith.constant 0 : i32
    return %c0_i32, %arg0 : i32, i32
  }
}

</mosaic_0001>

<bundles_post_ra>
// kernel: tpu_custom_call.1
= control target key start
LH: loop header
LB: loop body
LE: loop exit
PB: predicated region body
PF: predicated region fallthrough
CT: control target
= control target key end

     0   :  { %7 = vsyncpa [#allocation3], 0  ;;  %s187_s0 = inlined_call_operand.hbm [shape: f32[16,128], index: 0, kind: input, shape index: {}]   ;;  %s188_s1 = inlined_call_operand.hbm [shape: f32[16,128], index: 1, kind: input, shape index: {}]   ;;  %s189_s2 = inlined_call_operand.hbm [shape: f32[8,128], index: 2, kind: output, shape index: {}]  }
   0x1   :  { %8 = vsyncpa [#allocation6], 0 }
   0x2   :  { %9 = vsyncpa [#allocation4], 0  ;;  %s158_s9 = smov [#allocation2]  }
   0x3   :  { %s19_s10 = sshll.u32 %s158_s9, 4  ;;  %s20_s10 = int_to_ptr.vmem [resolvable:$true] %s19_s10 }
   0x4   :  { %s100_s11 = scalar_lea.vmem %s20_s10, 256  ;;  %p105_p1 = scmp.lt.s32.totalorder %s20_s10, %s20_s10 }
   0x5   :  { %p101_p0 = scmp.ne.s32.totalorder %s20_s10, %s100_s11  ;;  %p106_p2 = scmp.lt.s32.totalorder %s100_s11, %s100_s11 }
   0x7   :  { %p107_p3 = por %p106_p2, %p105_p1 }
   0x9   :  { %p108_p4 = pnand %p107_p3, %p101_p0 }
   0xb   :  { %111 = shalt.err (!%p108_p4)
}
   0xc   :  { %s159_s12 = smov 128   ;;  %s160_s13 = smov 8  }
   0xd   :  { %25 = dma.hbm_to_vmem [thread:$0]  %s187_s0, 256, %s20_s10, [#allocation3], %s159_s12, %s159_s12, %s160_s13  }
   0xe   :  { %s161_s16 = smov [#allocation5]  }
   0xf   :  { %s35_s17 = sshll.u32 %s161_s16, 4  ;;  %s36_s17 = int_to_ptr.vmem [resolvable:$true] %s35_s17 }
  0x10   :  { %s120_s18 = scalar_lea.vmem %s36_s17, 256  ;;  %p125_p6 = scmp.lt.s32.totalorder %s36_s17, %s36_s17 }
  0x11   :  { %p121_p5 = scmp.ne.s32.totalorder %s36_s17, %s120_s18  ;;  %p126_p7 = scmp.lt.s32.totalorder %s120_s18, %s120_s18 }
  0x13   :  { %p127_p8 = por %p126_p7, %p125_p6 }
  0x15   :  { %p128_p9 = pnand %p127_p8, %p121_p5 }
  0x17   :  { %131 = shalt.err (!%p128_p9)
}
  0x18   :  { %41 = dma.hbm_to_vmem [thread:$0]  %s188_s1, 256, %s36_s17, [#allocation6], %s159_s12, %s159_s12, %s160_s13  }
  0x19   :  { %152 = dma.done.wait [#allocation3], 256  }
  0x1a   :  { %153 = vsyncadd [#allocation3], 4294967040 }
  0x1b   :  { %154 = dma.done.wait [#allocation6], 256  }
  0x1c   :  { %155 = vsyncadd [#allocation6], 4294967040  ;;  %v57_v0 = vld [vmem:[#allocation2] sm:$0xff]  ;;  %v58_v1 = vld [vmem:[#allocation2 + $0x8] sm:$0xff]  ;;  %s162_s0 = smov [#allocation7]  }
  0x1d   :  { %v59_v2 = vld [vmem:[#allocation5] sm:$0xff]  ;;  %v60_v3 = vld [vmem:[#allocation5 + $0x8] sm:$0xff]  ;;  %s76_s21 = sshll.u32 %s162_s0, 4  ;;  %s77_s21 = int_to_ptr.vmem [resolvable:$true] %s76_s21 }
  0x1e   :  { %v61_v4 = vsub.f32 %v57_v0, %v59_v2  ;;  %v62_v5 = vsub.f32 %v58_v1, %v60_v3  ;;  %s132_s22 = scalar_lea.vmem %s77_s21, 128  ;;  %p137_p11 = scmp.lt.s32.totalorder %s77_s21, %s77_s21 }
  0x1f   :  { %p133_p10 = scmp.ne.s32.totalorder %s77_s21, %s132_s22  ;;  %p138_p12 = scmp.lt.s32.totalorder %s132_s22, %s132_s22 }
  0x20   :  { %v63_v6 = vand.u32 2147483647, %v61_v4  ;;  %v64_v7 = vand.u32 2147483647, %v62_v5 }
  0x21   :  { %p139_p13 = por %p138_p12, %p137_p11 }
  0x22   :  { %v65_v8 = vadd.f32 %v64_v7, %v63_v6 }
  0x23   :  { %p140_p0 = pnand %p139_p13, %p133_p10 }
  0x24   :  { %69 = vst [vmem:[#allocation7] sm:$0xff] %v65_v8 }
  0x25   :  { %143 = shalt.err (!%p140_p0)
}
  0x26   :  { %79 = dma.vmem_to_hbm [thread:$0]  %s77_s21, 128, %s189_s2, [#allocation4]  }
  0x27   :  { %156 = dma.done.wait [#allocation4], 128  }
  0x28   :  { %157 = vsyncadd [#allocation4], 4294967168 }
  0x29   :  { %83 = vsyncpa [#allocation3], 1 }
  0x2a   :  { %84 = vsyncpa [#allocation6], 1 }
  0x2b   :  { %85 = vsyncpa [#allocation4], 1 }

</bundles_post_ra>
